<compile_context>
chip_gen: v7x
topology: tpu7x:2x2x1
jax: 0.10.0
libtpu: 0.0.40
codegen_flags: <defaults>
</compile_context>

<pallas_src>
import functools

import jax
import jax.numpy as jnp
from jax.experimental import pallas as pl
from jax.experimental.pallas import tpu as pltpu


def _round_up(x, m):
    return (x + m - 1) // m * m


def _cdiv(a, b):
    return (a + b - 1) // b


def _hinge_loss_kernel(targets_ref, inputs_ref, out_m_ref, out_i_ref,
                       acc_m_ref, acc_i_ref, *,
                       n_valid, c_valid, max_margin, min_margin,
                       lamda, inv_lamda, need_row_mask, need_col_mask,
                       c_is_tiled):
    p = pl.program_id(0)          # TensorCore partition   (parallel)
    i = pl.program_id(1)          # N-block inside partition (arbitrary)
    j = pl.program_id(2)          # C-block                  (arbitrary)
    bn, bc = inputs_ref.shape     # (block_n, block_c)

    @pl.when((i == 0) & (j == 0))
    def _init():
        acc_m_ref[...] = jnp.zeros_like(acc_m_ref)
        acc_i_ref[...] = jnp.zeros_like(acc_i_ref)

    # Elementwise math stays in bf16 for bf16 inputs (v6e/v7x bf16 VALUs);
    # everything else computes in f32.  Accumulation is always f32.
    cdt = jnp.bfloat16 if inputs_ref.dtype == jnp.bfloat16 else jnp.float32
    x = inputs_ref[...].astype(cdt)                       # (bn, bc)
    tgt = targets_ref[...]                                # (bn, 1) int32

    col_ids = jax.lax.broadcasted_iota(jnp.int32, (bn, bc), 1)
    if c_is_tiled:
        col_ids = col_ids + j * bc
    is_target = col_ids == tgt                            # one-hot, no gather

    mask = jnp.where(is_target, jnp.asarray(-lamda, cdt),
                     jnp.asarray(inv_lamda, cdt))
    margin = jnp.where(is_target, jnp.asarray(min_margin, cdt),
                       jnp.asarray(max_margin, cdt))
    loss_m = jnp.maximum(mask * (x - margin), jnp.asarray(0.0, cdt))
    loss_inter = jnp.where(is_target, jnp.asarray(0.0, cdt), loss_m)

    def accumulate(lm, li):
        # Fold rows in groups of 8: pure vreg-to-vreg VPU adds into the small
        # (8, bc) f32 partial accumulators (no full-tile accumulator RMW).
        acc_m_ref[...] += jnp.sum(lm.reshape(bn // 8, 8, bc), axis=0,
                                  dtype=jnp.float32)
        acc_i_ref[...] += jnp.sum(li.reshape(bn // 8, 8, bc), axis=0,
                                  dtype=jnp.float32)

    if not (need_row_mask or need_col_mask):
        accumulate(loss_m, loss_inter)
    else:
        # Only boundary (ragged / wrapped) tiles pay for the validity mask.
        k = p * pl.num_programs(1) + i                    # unclamped row block
        row_start = k * bn
        conds = []
        if need_row_mask:
            conds.append(k >= n_valid // bn)
        if need_col_mask:
            conds.append(j >= c_valid // bc)
        is_boundary = conds[0]
        for cnd in conds[1:]:
            is_boundary = is_boundary | cnd

        @pl.when(is_boundary)
        def _masked_tile():
            valid = None
            if need_row_mask:
                row_ids = (jax.lax.broadcasted_iota(jnp.int32, (bn, bc), 0)
                           + row_start)
                valid = row_ids < n_valid
            if need_col_mask:
                cval = col_ids < c_valid
                valid = cval if valid is None else (valid & cval)
            zero = jnp.asarray(0.0, cdt)
            accumulate(jnp.where(valid, loss_m, zero),
                       jnp.where(valid, loss_inter, zero))

        @pl.when(jnp.logical_not(is_boundary))
        def _interior_tile():
            accumulate(loss_m, loss_inter)

    @pl.when((i == pl.num_programs(1) - 1) & (j == pl.num_programs(2) - 1))
    def _finalize():
        inv_n = jnp.float32(1.0 / n_valid)                # global N
        out_m_ref[...] = jnp.full((1, 8, 128),
                                  jnp.sum(acc_m_ref[...]) * inv_n, jnp.float32)
        out_i_ref[...] = jnp.full((1, 8, 128),
                                  jnp.sum(acc_i_ref[...]) * inv_n, jnp.float32)


def _choose_blocks(n, c, itemsize, block_n=None, block_c=None):
    # ----- class (lane) tile -----
    if block_c is None:
        block_c = c if c <= 4096 else 4096
    block_c = int(block_c)
    if block_c >= c:
        block_c = c                                  # full last dim (128-rule exempt)
    else:
        block_c = max(128, (block_c // 128) * 128)   # tiled C must be lane aligned
    bc_pad = _round_up(block_c, 128)

    # ----- batch (sublane) tile from a conservative VMEM budget -----
    # per row: double-buffered input + double-buffered (lane-padded) targets
    # + room for two f32 elementwise temporaries of the tile.
    per_row = bc_pad * (2 * itemsize + 2 * 4) + 2 * 128 * 4
    fixed = 2 * 8 * bc_pad * 4 + (1 << 20)           # (8, block_c) accumulators + slack
    if block_n is None:
        budget = 24 * 1024 * 1024                    # safe on v5e/v6e/v7x
        block_n = max(8, (budget - fixed) // per_row)
    block_n = int(block_n)
    block_n = min(block_n, 1024, max(8, (n // 8) * 8))
    block_n = max(8, (block_n // 8) * 8)

    est = per_row * block_n + fixed
    vmem_limit = int(min(max(est + est // 4, 16 << 20), 32 << 20))
    return block_n, block_c, vmem_limit


def hinge_loss(inputs, targets, *, max_margin=-25.0, min_margin=50.0,
               lamda=1.0, inv_lamda=1.0, block_n=None, block_c=None,
               num_parts=2):
    """Pallas TPU implementation of HingeLoss.forward.

    inputs:  (N, C) float array of scores (f32 or bf16)
    targets: (N,)   int array of class indices
    returns: (loss_m.sum() / N, loss_inter.sum() / N) as float32 scalars
    """
    n, c = inputs.shape
    block_n, block_c, vmem_limit = _choose_blocks(
        n, c, inputs.dtype.itemsize, block_n=block_n, block_c=block_c)

    n_blocks = _cdiv(n, block_n)
    c_blocks = _cdiv(c, block_c)
    num_parts = max(1, min(int(num_parts), n_blocks))
    nbp = _cdiv(n_blocks, num_parts)                 # N-blocks per partition

    need_row_mask = (num_parts * nbp * block_n) != n
    need_col_mask = (c_blocks * block_c) != c
    c_is_tiled = c_blocks > 1

    # Clamp (via wrap-around) the overflow row-blocks of the last partition so
    # the DMA never reads past the array; those blocks are fully masked
    # in-kernel because their *unclamped* row index is >= n.
    if num_parts * nbp == n_blocks:
        def row_block(pp, ii):
            return pp * nbp + ii
    else:
        def row_block(pp, ii):
            return (pp * nbp + ii) % n_blocks

    tgt2d = targets.astype(jnp.int32).reshape(n, 1)

    kernel = functools.partial(
        _hinge_loss_kernel,
        n_valid=int(n), c_valid=int(c),
        max_margin=float(max_margin), min_margin=float(min_margin),
        lamda=float(lamda), inv_lamda=float(inv_lamda),
        need_row_mask=bool(need_row_mask), need_col_mask=bool(need_col_mask),
        c_is_tiled=bool(c_is_tiled),
    )

    out_m, out_i = pl.pallas_call(
        kernel,
        out_shape=(jax.ShapeDtypeStruct((num_parts, 8, 128), jnp.float32),
                   jax.ShapeDtypeStruct((num_parts, 8, 128), jnp.float32)),
        grid_spec=pltpu.PrefetchScalarGridSpec(
            num_scalar_prefetch=0,
            grid=(num_parts, nbp, c_blocks),
            in_specs=[
                pl.BlockSpec((block_n, 1),
                             lambda pp, ii, jj: (row_block(pp, ii), 0)),
                pl.BlockSpec((block_n, block_c),
                             lambda pp, ii, jj: (row_block(pp, ii), jj)),
            ],
            out_specs=(
                pl.BlockSpec((1, 8, 128), lambda pp, ii, jj: (pp, 0, 0)),
                pl.BlockSpec((1, 8, 128), lambda pp, ii, jj: (pp, 0, 0)),
            ),
            scratch_shapes=[
                pltpu.VMEM((8, block_c), jnp.float32),   # partial acc loss_m
                pltpu.VMEM((8, block_c), jnp.float32),   # partial acc loss_inter
            ],
        ),
        compiler_params=pltpu.CompilerParams(
            dimension_semantics=("parallel", "arbitrary", "arbitrary"),
            vmem_limit_bytes=vmem_limit,
        ),
    )(tgt2d, inputs)

    # One scalar per TensorCore partition; sum them in the wrapper.
    return out_m[:, 0, 0].sum(), out_i[:, 0, 0].sum()


def _hinge_loss_ref(inputs, targets, *, max_margin=-25.0, min_margin=50.0,
                    lamda=1.0, inv_lamda=1.0):
    """Pure-JAX reference matching the PyTorch module exactly."""
    n, c = inputs.shape
    onehot = jax.nn.one_hot(targets, c, dtype=jnp.float32)
    mask = jnp.where(onehot > 0, -lamda, inv_lamda)
    mask_negative = jnp.where(onehot > 0, 0.0, 1.0)
    margin = jnp.where(onehot > 0, min_margin, max_margin)
    loss_m = jnp.maximum(mask * (inputs.astype(jnp.float32) - margin), 0.0)
    loss_inter = loss_m * mask_negative
    return loss_m.sum() / n, loss_inter.sum() / n


if __name__ == "__main__":
    key = jax.random.PRNGKey(0)
    k_x, k_t, k_x2, k_t2 = jax.random.split(key, 4)

    # ---- Case 1: small explicit blocks (2 partitions, ragged + wrapped rows).
    N, C = 20, 40
    inputs = jax.random.normal(k_x, (N, C), dtype=jnp.float32) * 30.0
    targets = jax.random.randint(k_t, (N,), 0, C, dtype=jnp.int32)
    ref_m, ref_i = _hinge_loss_ref(inputs, targets)

    out_m, out_i = hinge_loss(inputs, targets, block_n=8)
    jax.block_until_ready((out_m, out_i))
    assert jnp.allclose(out_m, ref_m, rtol=1e-4, atol=1e-3), (out_m, ref_m)
    assert jnp.allclose(out_i, ref_i, rtol=1e-4, atol=1e-3), (out_i, ref_i)

    # ---- Case 2: auto-sized blocks.
    out_m2, out_i2 = hinge_loss(inputs, targets)
    jax.block_until_ready((out_m2, out_i2))
    assert jnp.allclose(out_m2, ref_m, rtol=1e-4, atol=1e-3), (out_m2, ref_m)
    assert jnp.allclose(out_i2, ref_i, rtol=1e-4, atol=1e-3), (out_i2, ref_i)

    # ---- Case 3: forced C tiling with a ragged last class block.
    N2, C2 = 24, 200
    inputs2 = jax.random.normal(k_x2, (N2, C2), dtype=jnp.float32) * 30.0
    targets2 = jax.random.randint(k_t2, (N2,), 0, C2, dtype=jnp.int32)
    ref_m2, ref_i2 = _hinge_loss_ref(inputs2, targets2)
    out_m3, out_i3 = hinge_loss(inputs2, targets2, block_n=8, block_c=128)
    jax.block_until_ready((out_m3, out_i3))
    assert jnp.allclose(out_m3, ref_m2, rtol=1e-4, atol=1e-3), (out_m3, ref_m2)
    assert jnp.allclose(out_i3, ref_i2, rtol=1e-4, atol=1e-3), (out_i3, ref_i2)

    # ---- Case 4: bf16 inputs (bf16-native elementwise math, f32 accumulate).
    inputs_bf = inputs.astype(jnp.bfloat16)
    ref_m_bf, ref_i_bf = _hinge_loss_ref(inputs_bf.astype(jnp.float32), targets)
    out_m4, out_i4 = hinge_loss(inputs_bf, targets)
    jax.block_until_ready((out_m4, out_i4))
    assert jnp.allclose(out_m4, ref_m_bf, rtol=2e-2, atol=1.0), (out_m4, ref_m_bf)
    assert jnp.allclose(out_i4, ref_i_bf, rtol=2e-2, atol=1.0), (out_i4, ref_i_bf)

    print("KERNEL_OK")
</pallas_src>

<mosaic_0001>
module attributes {stable_mosaic.version = 11 : i64} {
  func.func @_hinge_loss_kernel(%arg0: i32, %arg1: i32, %arg2: i32, %arg3: memref<8x1xi32, #tpu.memory_space<vmem>>, %arg4: memref<8x40xf32, #tpu.memory_space<vmem>>, %arg5: memref<1x8x128xf32, #tpu.memory_space<vmem>>, %arg6: memref<1x8x128xf32, #tpu.memory_space<vmem>>, %arg7: memref<8x40xf32, #tpu.memory_space<vmem>>, %arg8: memref<8x40xf32, #tpu.memory_space<vmem>>) attributes {dimension_semantics = [#tpu.dimension_semantics<parallel>, #tpu.dimension_semantics<arbitrary>, #tpu.dimension_semantics<arbitrary>], iteration_bounds = array<i64: 2, 2, 1>, scalar_prefetch = 0 : i64, scratch_operands = 2 : i64, tpu.core_type = #tpu.core_type<tc>, window_params = [{transform_indices = @transform_0, window_bounds = array<i64: 8, 1>}, {transform_indices = @transform_1, window_bounds = array<i64: 8, 40>}, {transform_indices = @transform_2, window_bounds = array<i64: 1, 8, 128>}, {transform_indices = @transform_3, window_bounds = array<i64: 1, 8, 128>}]} {
    %c0_i32 = arith.constant 0 : i32
    %0 = arith.cmpi eq, %arg1, %c0_i32 : i32
    %c0_i32_0 = arith.constant 0 : i32
    %1 = arith.cmpi eq, %arg2, %c0_i32_0 : i32
    %2 = arith.andi %0, %1 : i1
    %3 = arith.extui %2 : i1 to i32
    %c0_i32_1 = arith.constant 0 : i32
    %4 = arith.cmpi ne, %3, %c0_i32_1 : i32
    scf.if %4 {
      %cst_15 = arith.constant 0.000000e+00 : f32
      %36 = vector.broadcast %cst_15 : f32 to vector<8x40xf32>
      %c0_16 = arith.constant 0 : index
      %c0_17 = arith.constant 0 : index
      %37 = vector.load %arg7[%c0_16, %c0_17] : memref<8x40xf32, #tpu.memory_space<vmem>>, vector<8x40xf32>
      tpu.vector_store %arg7[%c0_16, %c0_17], %36 {strides = array<i32>} : memref<8x40xf32, #tpu.memory_space<vmem>>, vector<8x40xf32>,
      %cst_18 = arith.constant 0.000000e+00 : f32
      %38 = vector.broadcast %cst_18 : f32 to vector<8x40xf32>
      %c0_19 = arith.constant 0 : index
      %c0_20 = arith.constant 0 : index
      %39 = vector.load %arg8[%c0_19, %c0_20] : memref<8x40xf32, #tpu.memory_space<vmem>>, vector<8x40xf32>
      tpu.vector_store %arg8[%c0_19, %c0_20], %38 {strides = array<i32>} : memref<8x40xf32, #tpu.memory_space<vmem>>, vector<8x40xf32>,
    } else {
    }
    %c0 = arith.constant 0 : index
    %c0_2 = arith.constant 0 : index
    %5 = vector.load %arg4[%c0, %c0_2] : memref<8x40xf32, #tpu.memory_space<vmem>>, vector<8x40xf32>
    %c0_3 = arith.constant 0 : index
    %c0_4 = arith.constant 0 : index
    %6 = vector.load %arg3[%c0_3, %c0_4] : memref<8x1xi32, #tpu.memory_space<vmem>>, vector<8x1xi32>
    %7 = tpu.iota {dimensions = array<i32: 1>} : vector<8x40xi32>
    %8 = vector.broadcast %6 : vector<8x1xi32> to vector<8x40xi32>
    %9 = arith.cmpi eq, %7, %8 : vector<8x40xi32>
    %cst = arith.constant -1.000000e+00 : f32
    %cst_5 = arith.constant 1.000000e+00 : f32
    %10 = vector.broadcast %cst : f32 to vector<8x40xf32>
    %11 = vector.broadcast %cst_5 : f32 to vector<8x40xf32>
    %12 = arith.select %9, %10, %11 : vector<8x40xi1>, vector<8x40xf32>
    %cst_6 = arith.constant 5.000000e+01 : f32
    %cst_7 = arith.constant -2.500000e+01 : f32
    %13 = vector.broadcast %cst_6 : f32 to vector<8x40xf32>
    %14 = vector.broadcast %cst_7 : f32 to vector<8x40xf32>
    %15 = arith.select %9, %13, %14 : vector<8x40xi1>, vector<8x40xf32>
    %16 = arith.subf %5, %15 : vector<8x40xf32>
    %17 = arith.mulf %12, %16 : vector<8x40xf32>
    %cst_8 = arith.constant 0.000000e+00 : f32
    %18 = vector.broadcast %cst_8 : f32 to vector<8x40xf32>
    %19 = arith.maximumf %17, %18 : vector<8x40xf32>
    %cst_9 = arith.constant 0.000000e+00 : f32
    %20 = vector.broadcast %cst_9 : f32 to vector<8x40xf32>
    %21 = arith.select %9, %20, %19 : vector<8x40xi1>, vector<8x40xf32>
    %c2_i32 = arith.constant 2 : i32
    %22 = arith.muli %arg0, %c2_i32 : i32
    %23 = arith.addi %22, %arg1 : i32
    %c8_i32 = arith.constant 8 : i32
    %24 = arith.muli %23, %c8_i32 : i32
    %c2_i32_10 = arith.constant 2 : i32
    %25 = arith.cmpi sge, %23, %c2_i32_10 : i32
    %26 = arith.extui %25 : i1 to i32
    %c0_i32_11 = arith.constant 0 : i32
    %27 = arith.cmpi ne, %26, %c0_i32_11 : i32
    scf.if %27 {
      %36 = tpu.iota {dimensions = array<i32: 0>} : vector<8x40xi32>
      %37 = vector.broadcast %24 : i32 to vector<8x40xi32>
      %38 = arith.addi %36, %37 : vector<8x40xi32>
      %c20_i32 = arith.constant 20 : i32
      %39 = vector.broadcast %c20_i32 : i32 to vector<8x40xi32>
      %40 = arith.cmpi slt, %38, %39 : vector<8x40xi32>
      %cst_15 = arith.constant 0.000000e+00 : f32
      %41 = vector.broadcast %cst_15 : f32 to vector<8x40xf32>
      %42 = arith.select %40, %19, %41 : vector<8x40xi1>, vector<8x40xf32>
      %cst_16 = arith.constant 0.000000e+00 : f32
      %43 = vector.broadcast %cst_16 : f32 to vector<8x40xf32>
      %44 = arith.select %40, %21, %43 : vector<8x40xi1>, vector<8x40xf32>
      %c0_17 = arith.constant 0 : index
      %c0_18 = arith.constant 0 : index
      %45 = vector.load %arg7[%c0_17, %c0_18] : memref<8x40xf32, #tpu.memory_space<vmem>>, vector<8x40xf32>
      %46 = vector.shape_cast %42 : vector<8x40xf32> to vector<1x8x40xf32>
      %cst_19 = arith.constant dense<0.000000e+00> : vector<8x40xf32>
      %47 = vector.multi_reduction <add>, %46, %cst_19 [0] : vector<1x8x40xf32> to vector<8x40xf32>
      %48 = arith.addf %45, %47 : vector<8x40xf32>
      %c0_20 = arith.constant 0 : index
      %c0_21 = arith.constant 0 : index
      %49 = vector.load %arg7[%c0_20, %c0_21] : memref<8x40xf32, #tpu.memory_space<vmem>>, vector<8x40xf32>
      tpu.vector_store %arg7[%c0_20, %c0_21], %48 {strides = array<i32>} : memref<8x40xf32, #tpu.memory_space<vmem>>, vector<8x40xf32>,
      %c0_22 = arith.constant 0 : index
      %c0_23 = arith.constant 0 : index
      %50 = vector.load %arg8[%c0_22, %c0_23] : memref<8x40xf32, #tpu.memory_space<vmem>>, vector<8x40xf32>
      %51 = vector.shape_cast %44 : vector<8x40xf32> to vector<1x8x40xf32>
      %cst_24 = arith.constant dense<0.000000e+00> : vector<8x40xf32>
      %52 = vector.multi_reduction <add>, %51, %cst_24 [0] : vector<1x8x40xf32> to vector<8x40xf32>
      %53 = arith.addf %50, %52 : vector<8x40xf32>
      %c0_25 = arith.constant 0 : index
      %c0_26 = arith.constant 0 : index
      %54 = vector.load %arg8[%c0_25, %c0_26] : memref<8x40xf32, #tpu.memory_space<vmem>>, vector<8x40xf32>
      tpu.vector_store %arg8[%c0_25, %c0_26], %53 {strides = array<i32>} : memref<8x40xf32, #tpu.memory_space<vmem>>, vector<8x40xf32>,
    } else {
    }
    %true = arith.constant true
    %28 = arith.xori %25, %true : i1
    %29 = arith.extui %28 : i1 to i32
    %c0_i32_12 = arith.constant 0 : i32
    %30 = arith.cmpi ne, %29, %c0_i32_12 : i32
    scf.if %30 {
      %c0_15 = arith.constant 0 : index
      %c0_16 = arith.constant 0 : index
      %36 = vector.load %arg7[%c0_15, %c0_16] : memref<8x40xf32, #tpu.memory_space<vmem>>, vector<8x40xf32>
      %37 = vector.shape_cast %19 : vector<8x40xf32> to vector<1x8x40xf32>
      %cst_17 = arith.constant dense<0.000000e+00> : vector<8x40xf32>
      %38 = vector.multi_reduction <add>, %37, %cst_17 [0] : vector<1x8x40xf32> to vector<8x40xf32>
      %39 = arith.addf %36, %38 : vector<8x40xf32>
      %c0_18 = arith.constant 0 : index
      %c0_19 = arith.constant 0 : index
      %40 = vector.load %arg7[%c0_18, %c0_19] : memref<8x40xf32, #tpu.memory_space<vmem>>, vector<8x40xf32>
      tpu.vector_store %arg7[%c0_18, %c0_19], %39 {strides = array<i32>} : memref<8x40xf32, #tpu.memory_space<vmem>>, vector<8x40xf32>,
      %c0_20 = arith.constant 0 : index
      %c0_21 = arith.constant 0 : index
      %41 = vector.load %arg8[%c0_20, %c0_21] : memref<8x40xf32, #tpu.memory_space<vmem>>, vector<8x40xf32>
      %42 = vector.shape_cast %21 : vector<8x40xf32> to vector<1x8x40xf32>
      %cst_22 = arith.constant dense<0.000000e+00> : vector<8x40xf32>
      %43 = vector.multi_reduction <add>, %42, %cst_22 [0] : vector<1x8x40xf32> to vector<8x40xf32>
      %44 = arith.addf %41, %43 : vector<8x40xf32>
      %c0_23 = arith.constant 0 : index
      %c0_24 = arith.constant 0 : index
      %45 = vector.load %arg8[%c0_23, %c0_24] : memref<8x40xf32, #tpu.memory_space<vmem>>, vector<8x40xf32>
      tpu.vector_store %arg8[%c0_23, %c0_24], %44 {strides = array<i32>} : memref<8x40xf32, #tpu.memory_space<vmem>>, vector<8x40xf32>,
    } else {
    }
    %c1_i32 = arith.constant 1 : i32
    %31 = arith.cmpi eq, %arg1, %c1_i32 : i32
    %c0_i32_13 = arith.constant 0 : i32
    %32 = arith.cmpi eq, %arg2, %c0_i32_13 : i32
    %33 = arith.andi %31, %32 : i1
    %34 = arith.extui %33 : i1 to i32
    %c0_i32_14 = arith.constant 0 : i32
    %35 = arith.cmpi ne, %34, %c0_i32_14 : i32
    scf.if %35 {
      %c0_15 = arith.constant 0 : index
      %c0_16 = arith.constant 0 : index
      %36 = vector.load %arg7[%c0_15, %c0_16] : memref<8x40xf32, #tpu.memory_space<vmem>>, vector<8x40xf32>
      %37 = vector.shape_cast %36 : vector<8x40xf32> to vector<1x8x40xf32>
      %cst_17 = arith.constant dense<0.000000e+00> : vector<1xf32>
      %38 = vector.multi_reduction <add>, %37, %cst_17 [1, 2] : vector<1x8x40xf32> to vector<1xf32>
      %39 = vector.shape_cast %38 : vector<1xf32> to vector<1x1x1xf32>
      %40 = vector.extract %39[0, 0, 0] : f32 from vector<1x1x1xf32>
      %cst_18 = arith.constant 5.000000e-02 : f32
      %41 = arith.mulf %40, %cst_18 : f32
      %42 = vector.broadcast %41 : f32 to vector<1x8x128xf32>
      %c0_19 = arith.constant 0 : index
      %c0_20 = arith.constant 0 : index
      %c0_21 = arith.constant 0 : index
      %43 = vector.load %arg5[%c0_19, %c0_20, %c0_21] : memref<1x8x128xf32, #tpu.memory_space<vmem>>, vector<1x8x128xf32>
      tpu.vector_store %arg5[%c0_19, %c0_20, %c0_21], %42 {strides = array<i32>} : memref<1x8x128xf32, #tpu.memory_space<vmem>>, vector<1x8x128xf32>,
      %c0_22 = arith.constant 0 : index
      %c0_23 = arith.constant 0 : index
      %44 = vector.load %arg8[%c0_22, %c0_23] : memref<8x40xf32, #tpu.memory_space<vmem>>, vector<8x40xf32>
      %45 = vector.shape_cast %44 : vector<8x40xf32> to vector<1x8x40xf32>
      %cst_24 = arith.constant dense<0.000000e+00> : vector<1xf32>
      %46 = vector.multi_reduction <add>, %45, %cst_24 [1, 2] : vector<1x8x40xf32> to vector<1xf32>
      %47 = vector.shape_cast %46 : vector<1xf32> to vector<1x1x1xf32>
      %48 = vector.extract %47[0, 0, 0] : f32 from vector<1x1x1xf32>
      %cst_25 = arith.constant 5.000000e-02 : f32
      %49 = arith.mulf %48, %cst_25 : f32
      %50 = vector.broadcast %49 : f32 to vector<1x8x128xf32>
      %c0_26 = arith.constant 0 : index
      %c0_27 = arith.constant 0 : index
      %c0_28 = arith.constant 0 : index
      %51 = vector.load %arg6[%c0_26, %c0_27, %c0_28] : memref<1x8x128xf32, #tpu.memory_space<vmem>>, vector<1x8x128xf32>
      tpu.vector_store %arg6[%c0_26, %c0_27, %c0_28], %50 {strides = array<i32>} : memref<1x8x128xf32, #tpu.memory_space<vmem>>, vector<1x8x128xf32>,
    } else {
    }
    return
  }
  func.func @transform_0(%arg0: i32, %arg1: i32, %arg2: i32) -> (i32, i32) {
    %c2_i32 = arith.constant 2 : i32
    %0 = arith.muli %arg0, %c2_i32 : i32
    %1 = arith.addi %0, %arg1 : i32
    %c3_i32 = arith.constant 3 : i32
    %c0_i32 = arith.constant 0 : i32
    %2 = arith.cmpi eq, %c3_i32, %c0_i32 : i32
    %c1_i32 = arith.constant 1 : i32
    %3 = arith.select %2, %c1_i32, %c3_i32 : i32
    %4 = arith.remsi %1, %3 : i32
    %c0_i32_0 = arith.constant 0 : i32
    %5 = arith.cmpi ne, %4, %c0_i32_0 : i32
    %c0_i32_1 = arith.constant 0 : i32
    %6 = arith.cmpi slt, %4, %c0_i32_1 : i32
    %c0_i32_2 = arith.constant 0 : i32
    %7 = arith.cmpi slt, %3, %c0_i32_2 : i32
    %8 = arith.xori %6, %7 : i1
    %9 = arith.andi %8, %5 : i1
    %10 = arith.addi %4, %3 : i32
    %11 = arith.select %9, %10, %4 : i32
    %c0_i32_3 = arith.constant 0 : i32
    %c0_i32_4 = arith.constant 0 : i32
    return %11, %c0_i32_3 : i32, i32
  }
  func.func @transform_1(%arg0: i32, %arg1: i32, %arg2: i32) -> (i32, i32) {
    %c2_i32 = arith.constant 2 : i32
    %0 = arith.muli %arg0, %c2_i32 : i32
    %1 = arith.addi %0, %arg1 : i32
    %c3_i32 = arith.constant 3 : i32
    %c0_i32 = arith.constant 0 : i32
    %2 = arith.cmpi eq, %c3_i32, %c0_i32 : i32
    %c1_i32 = arith.constant 1 : i32
    %3 = arith.select %2, %c1_i32, %c3_i32 : i32
    %4 = arith.remsi %1, %3 : i32
    %c0_i32_0 = arith.constant 0 : i32
    %5 = arith.cmpi ne, %4, %c0_i32_0 : i32
    %c0_i32_1 = arith.constant 0 : i32
    %6 = arith.cmpi slt, %4, %c0_i32_1 : i32
    %c0_i32_2 = arith.constant 0 : i32
    %7 = arith.cmpi slt, %3, %c0_i32_2 : i32
    %8 = arith.xori %6, %7 : i1
    %9 = arith.andi %8, %5 : i1
    %10 = arith.addi %4, %3 : i32
    %11 = arith.select %9, %10, %4 : i32
    %c0_i32_3 = arith.constant 0 : i32
    return %11, %arg2 : i32, i32
  }
  func.func @transform_2(%arg0: i32, %arg1: i32, %arg2: i32) -> (i32, i32, i32) {
    %c0_i32 = arith.constant 0 : i32
    %c0_i32_0 = arith.constant 0 : i32
    %c0_i32_1 = arith.constant 0 : i32
    return %arg0, %c0_i32, %c0_i32_0 : i32, i32, i32
  }
  func.func @transform_3(%arg0: i32, %arg1: i32, %arg2: i32) -> (i32, i32, i32) {
    %c0_i32 = arith.constant 0 : i32
    %c0_i32_0 = arith.constant 0 : i32
    %c0_i32_1 = arith.constant 0 : i32
    return %arg0, %c0_i32, %c0_i32_0 : i32, i32, i32
  }
}

</mosaic_0001>

<bundles_post_ra>
// kernel: tpu_custom_call.1
= control target key start
LH: loop header
LB: loop body
LE: loop exit
PB: predicated region body
PF: predicated region fallthrough
CT: control target
= control target key end

     0   :  { %9 = vsyncpa [#allocation5], 0  ;;  %s1148_s0 = inlined_call_operand.vmem [shape: s32[20,1], index: 0, kind: input, shape index: {}]   ;;  %s1149_s1 = inlined_call_operand.vmem [shape: f32[20,40], index: 1, kind: input, shape index: {}]   ;;  %s1150_s2 = inlined_call_operand.hbm [shape: f32[2,8,128], index: 2, kind: output, shape index: {0}]   ;;  %s1151_s3 = inlined_call_operand.hbm [shape: f32[2,8,128], index: 3, kind: output, shape index: {1}]  }
   0x1   :  { %11 = vsyncpa [#allocation5 + $0x1], 0 }
   0x2   :  { %12 = vsyncpa [#allocation7], 0 }
   0x3   :  { %14 = vsyncpa [#allocation7 + $0x1], 0  ;;  %s968_s12 = smov 0   ;;  %s970_s13 = smov 0  }
   0x4   :  { %s972_s14 = smov 0   ;;  %s974_s15 = smov 0  }
   0x5   :  { %s976_s16 = smov 0   ;;  %s978_s17 = smov 0  }
   0x6   :  { %s980_s18 = smov 0   ;;  %s982_s19 = smov 0  }
   0x7 LB: > { %s679_s20 = sadd.s32 4294967295, %s940_s19   ;;  %s680_s21 = sadd.s32 4294967294, %s940_s19   ;;  %s940_s19 = sphi %s982_s19, %s20_s19   ;;  %s936_s18 = sphi %s980_s18, %s1163_s18   ;;  %s932_s17 = sphi %s978_s17, %s1162_s17   ;;  %s928_s16 = sphi %s976_s16, %s1161_s16   ;;  %s924_s15 = sphi %s974_s15, %s1160_s15   ;;  %s920_s14 = sphi %s972_s14, %s1159_s14   ;;  %s916_s13 = sphi %s970_s13, %s1158_s13   ;;  %s912_s12 = sphi %s968_s12, %s1157_s12  }
   0x8   : > { %s35_s22 = sadd.s32 1, %s932_s17  ;;  %s39_s23 = sadd.s32 1, %s936_s18 }
   0x9   : > { %p37_p0 = scmp.ge.s32.totalorder %s35_s22, 2  ;;  %p170_p1 = scmp.ne.s32.totalorder %s920_s14, %s916_s13 }
   0xa   : > { %p171_p2 = scmp.eq.s32.totalorder %s679_s20, 3  ;;  %p176_p4 = scmp.ne.s32.totalorder %s916_s13, %s912_s12 }
   0xb   : > { %s1165_s22 = smov (%p37_p0, %s35_s22), 0  ;;  %s1167_s23 = smov (!%p37_p0, %s39_s23), %s936_s18 }
   0xc   : > { %p1017_p3 = por %p171_p2, %p170_p1  ;;  %p41_p5 = scmp.ge.s32.totalorder %s1167_s23, 2 }
   0xd   : > { %p177_p6 = scmp.eq.s32.totalorder %s680_s21, 3  ;;  %p699_p7 = scmp.ge.s32.totalorder %s940_s19, 1 }
   0xe   : > { %p298_p8 = scmp.lt.s32.totalorder %s940_s19, 5  ;;  %s1169_s23 = smov (%p41_p5, %s1167_s23), 0 }
   0xf   : > { %1154 = sst [smem:[#allocation10_spill]] %s1169_s23  ;;  %p1027_p9 = por %p177_p6, %p176_p4 }
  0x10   : > { %p299_p10 = pnand %p699_p7, %p298_p8  ;;  %s157_s26 = ssub.s32 %s936_s18, %s1169_s23 }
  0x11   : > { %s160_s27 = sadd.s32 1, %s920_s14  ;;  %p158_p11 = scmp.eq.s32.totalorder %s157_s26, 0 }
  0x12   : > { %302 = sbr.rel (%p299_p10) target bundleno = 465 (0x1d1), region = 28  ;;  %s1038_s29 = sand.u32 (!%p299_p10), 1, %s916_s13  }
  0x13   : > { %s1035_s28 = scalar_select %p158_p11, %s920_s14, %s160_s27  }
  0x14   : > { %s702_s30 = sshll.u32 (!%p299_p10), %s928_s16, 1  ;;  %s700_s4 = sshll.u32 (!%p299_p10), %s1038_s29, 3 }
  0x15   : > { %s1043_s5 = sadd.s32 (!%p299_p10), %s924_s15, %s702_s30  ;;  %p434_p12 = scmp.eq.s32.totalorder (!%p299_p10), %s924_s15, 0 }
  0x16   : > { %s366_s6 = ssub.s32 (!%p299_p10), 0, %s1043_s5  ;;  %p365_p13 = scmp.lt.s32.totalorder (!%p299_p10), %s1043_s5, 0 }
  0x17   : > { %s703_s7 = smin.u32 (!%p299_p10), %s366_s6, %s1043_s5  ;;  %s1057_s23 = scalar_lea.vmem (!%p299_p10), [#allocation6], %s700_s4 }
  0x18   : > { %811 = sdivrem.u32 (!%p299_p10), %s703_s7, 3  ;;  %s1055_s7 = scalar_lea.vmem (!%p299_p10), [#allocation4], %s700_s4 }
  0x19   : > { %vm440_vm0 = vcmask (%p434_p12), 326656   ;;  %v942_v0 = vmov (%p434_p12), 0.0  }
  0x1a   : > { %441 = vst.msk [vmem:[#allocation2] sm:$0xff] (%p434_p12), %vm440_vm0, %v942_v0  ;;  %442 = vst.msk [vmem:[#allocation3] sm:$0xff] (%p434_p12), %vm440_vm0, %v942_v0 }
  0x21   : > { %s812_s8 = spop.drf %811 }
  0x22   : > { %s370_s9 = ssub.s32 0, %s812_s8 }
  0x23   : > { %s1171_s9 = smov (!%p365_p13, %s370_s9), %s812_s8 }
  0x24   : > { %p705_p0 = scmp.lt.s32.totalorder %s1171_s9, 0  ;;  %s376_s10 = sadd.s32 3, %s1171_s9 }
  0x25   : > { %439 = sbr.rel (!%p434_p12) target bundleno = 44 (0x2c), region = 32 }
  0x26   : > { %s1173_s10 = smov (!%p705_p0, %s376_s10), %s1171_s9 }
  0x27   : > { %p378_p1 = scmp.lt.s32.totalorder %s1173_s10, 2 }
  0x29   : > { %s1175_s10 = smov (!%p378_p1, %s1173_s10), 2 }
  0x2a   : > { %s706_s11 = sshll.u32 %s1175_s10, 3 }
  0x2b   : > { %s381_s26 = scalar_lea.vmem %s1148_s0, %s706_s11  ;;  %s418_s6 = scalar_lea.vmem %s1149_s1, %s706_s11 }
  0x2c PF: > { %v444_v1 = vld [vmem:[%s381_s26] sm:$0xff]  ;;  %v943_v2 = vmov 0   ;;  %s714_s8 = sshll.u32 %s1043_s5, 3  ;;  %v445_v3 = vlaneseq  ;;  %v944_v7 = vmov -25.0   ;;  %v945_v10 = vmov 1.0   ;;  %p715_p2 = scmp.lt.s32.totalorder %s1043_s5, 2 }
  0x2d   : > { %813 = vset.pattern.permute.xlu0 %v943_v2  ;;  %v443_v6 = vld [vmem:[%s418_s6] sm:$0xff]  ;;  %v466_v16 = vstv (!%p715_p2), %s714_s8  ;;  %v471_v18 = vld [vmem:[#allocation2] sm:$0xff] (!%p715_p2)  ;;  %vm474_vm3 = vcmask (!%p715_p2), 326656  }
  0x2e   : > { %448 = vperm.xlu0 %813, %v444_v1   ;;  %v446_v4 = vand.u32 127, %v445_v3  ;;  %v465_v15 = vshrl.u32 (!%p715_p2), %v445_v3, 7  ;;  %v476_v19 = vld [vmem:[#allocation3] sm:$0xff] (!%p715_p2) }
  0x30   : > { %v467_v17 = vadd.s32 (!%p715_p2), %v466_v16, %v465_v15 }
  0x32   : > { %vm468_vm2 = vcmp.lt.s32.totalorder (!%p715_p2), %v467_v17, 20 }
  0xad   : > { %v449_v5 = vpop.permute.xlu0 %448 }
  0xae   : > { %vm450_vm1 = vcmp.eq.s32.totalorder %v446_v4, %v449_v5 }
  0xaf   : > { %v452_v8 = vsel %vm450_vm1, 50.0, %v944_v7  ;;  %v451_v11 = vsel %vm450_vm1, -1.0, %v945_v10 }
  0xb0   : > { %v453_v9 = vsub.f32 %v443_v6, %v452_v8  ;;  %463 = sbr.rel (%p715_p2) target bundleno = 187 (0xbb), region = 36 }
  0xb2   : > { %v454_v12 = vmul.f32 %v453_v9, %v451_v11 }
  0xb4   : > { %v455_v13 = vmax.f32 %v454_v12, 0.0 }
  0xb6   : > { %v456_v14 = vsel %vm450_vm1, 0.0, %v455_v13  ;;  %v469_v20 = vsel (!%p715_p2), %vm468_vm2, %v455_v13, 0.0 }
  0xb7   : > { %v470_v21 = vsel %vm468_vm2, %v456_v14, 0.0  ;;  %v473_v22 = vadd.f32 %v471_v18, %v469_v20 }
  0xb8   : > { %v478_v23 = vadd.f32 %v476_v19, %v470_v21 }
  0xb9   : > { %475 = vst.msk [vmem:[#allocation2] sm:$0xff] %vm474_vm3, %v473_v22 }
  0xba   : > { %479 = vst.msk [vmem:[#allocation3] sm:$0xff] %vm474_vm3, %v478_v23 }
  0xbb PF: > { %p716_p4 = scmp.ge.s32.totalorder %s1043_s5, 2 }
  0xbc   : > { %vm487_vm4 = vcmask (!%p716_p4), 326656  }
  0xbd   : > { %483 = sbr.rel (%p716_p4) target bundleno = 197 (0xc5), region = 40 }
  0xc0   : > { %v484_v24 = vld [vmem:[#allocation2] sm:$0xff] (!%p716_p4) }
  0xc1   : > { %v489_v25 = vld [vmem:[#allocation3] sm:$0xff] (!%p716_p4)  ;;  %v486_v26 = vadd.f32 (!%p716_p4), %v484_v24, %v455_v13 }
  0xc2   : > { %v491_v27 = vadd.f32 (!%p716_p4), %v489_v25, %v456_v14 }
  0xc3   : > { %488 = vst.msk [vmem:[#allocation2] sm:$0xff] (!%p716_p4), %vm487_vm4, %v486_v26 }
  0xc4   : > { %492 = vst.msk [vmem:[#allocation3] sm:$0xff] %vm487_vm4, %v491_v27 }
  0xc5 PF: > { %p493_p5 = scmp.eq.s32.totalorder %s924_s15, 1 }
  0xc6   : > { %vm499_vm5 = vcmask (%p493_p5), 326656  }
  0xc7   : > { %497 = sbr.rel (!%p493_p5) target bundleno = 417 (0x1a1), region = 44 }
  0xcb   : > { %v498_v28 = vld [vmem:[#allocation2] sm:$0xff] (%p493_p5)  ;;  %v513_v29 = vld [vmem:[#allocation3] sm:$0xff] (%p493_p5) }
  0xcc   : > { %v500_v30 = vsel (%p493_p5), %vm499_vm5, %v498_v28, 0.0  ;;  %v514_v31 = vsel (%p493_p5), %vm499_vm5, %v513_v29, 0.0 }
  0xcd   : > { %501 = vadd.xlane.f32.xlu0 (%p493_p5), %v500_v30 }
  0xd1   : > { %515 = vadd.xlane.f32.xlu0 %v514_v31 }
 0x15a   : > { %v502_v32 = vpop.xlane.xlu0 %501 }
 0x15b   : > { %v503_v33 = vrot.slane %v502_v32, 4 }
 0x15d   : > { %v504_v34 = vadd.f32 %v503_v33, %v502_v32 }
 0x15e   : > { %v516_v35 = vpop.xlane.xlu0 %515 }
 0x15f   : > { %v505_v36 = vrot.slane %v504_v34, 2  ;;  %v517_v37 = vrot.slane %v516_v35, 4 }
 0x161   : > { %v518_v38 = vadd.f32 %v517_v37, %v516_v35  ;;  %v506_v39 = vadd.f32 %v505_v36, %v504_v34 }
 0x163   : > { %v519_v40 = vrot.slane %v518_v38, 2  ;;  %v507_v41 = vrot.slane %v506_v39, 1 }
 0x165   : > { %v520_v42 = vadd.f32 %v519_v40, %v518_v38  ;;  %v508_v43 = vadd.f32 %v507_v41, %v506_v39 }
 0x167   : > { %726 = vpush %v508_v43  ;;  %v521_v44 = vrot.slane %v520_v42, 1 }
 0x169   : > { %v522_v45 = vadd.f32 %v521_v44, %v520_v42 }
 0x16b   : > { %728 = vpush %v522_v45 }
 0x198   : > { %s727_s15 = spop %726 }
 0x199   : > { %s510_s4 = smul.f32 0.05, %s727_s15 }
 0x19b   : > { %v511_v46 = vstv %s510_s4 }
 0x19c   : > { %512 = vst [vmem:[%s1055_s7] sm:$0xff] %v511_v46  ;;  %s729_s5 = spop %728 }
 0x19d   : > { %s524_s9 = smul.f32 0.05, %s729_s5 }
 0x19f   : > { %v525_v47 = vstv %s524_s9 }
 0x1a0   : > { %526 = vst [vmem:[%s1057_s23] sm:$0xff] %v525_v47 }
 0x1a1 PF: > { %s720_s10 = sshll.u32 %s928_s16, 7  ;;  %s546_s26 = sshll.u32 %s1055_s7, 4  ;;  %s547_s26 = int_to_ptr.vmem [resolvable:$true] %s546_s26 }
 0x1a2   : > { %s1073_s21 = scalar_lea.hbm %s1150_s2, %s720_s10  ;;  %s528_s27 = scalar_lea.sflag [#allocation5], %s1038_s29 }
 0x1a3   : > { %s814_s30 = scalar_lea.vmem %s547_s26, 128  ;;  %s946_s6 = smov [#allocation4]  }
 0x1a4   : > { %p815_p6 = scmp.ne.s32.totalorder %s547_s26, %s814_s30  ;;  %s818_s8 = sshll.u32 %s946_s6, 4  ;;  %s819_s8 = int_to_ptr.vmem [resolvable:$false] %s818_s8 }
 0x1a5   : > { %s820_s15 = scalar_lea.vmem %s819_s8, 256  ;;  %p821_p10 = scmp.lt.s32.totalorder %s547_s26, %s819_s8 }
 0x1a6   : > { %p816_p7 = pnand %p815_p6, %p1017_p3  ;;  %p822_p11 = scmp.lt.s32.totalorder %s820_s15, %s814_s30 }
 0x1a8   : > { %p817_p8 = pneg %p816_p7  ;;  %p823_p12 = por %p822_p11, %p821_p10 }
 0x1aa   : > { %p824_p13 = pnand %p823_p12, %p817_p8 }
 0x1ac   : > { %827 = shalt.err (!%p824_p13)
}
 0x1ad   : > { %s828_s7 = scalar_lea.hbm %s1073_s21, 128  ;;  %s832_s9 = scalar_lea.hbm %s1150_s2, 256 }
 0x1ae   : > { %p829_p0 = scmp.ne.s32.totalorder %s1073_s21, %s828_s7  ;;  %p833_p4 = scmp.lt.u32.totalorder %s1073_s21, %s1150_s2 }
 0x1af   : > { %p834_p5 = scmp.lt.u32.totalorder %s832_s9, %s828_s7  ;;  %p836_p7 = scmp.lt.u32.totalorder %s828_s7, %s1073_s21 }
 0x1b0   : > { %p830_p1 = pnand %p829_p0, %p1017_p3 }
 0x1b1   : > { %p835_p6 = por %p834_p5, %p833_p4 }
 0x1b2   : > { %p831_p2 = pneg %p830_p1 }
 0x1b3   : > { %p837_p8 = por %p836_p7, %p835_p6 }
 0x1b5   : > { %p838_p10 = pnand %p837_p8, %p831_p2 }
 0x1b7   : > { %841 = shalt.err (!%p838_p10)
}
 0x1b8   : > { %730 = dma.vmem_to_hbm [thread:$0]  (%p1017_p3), %s547_s26, 128, %s1073_s21, %s528_s27  }
 0x1b9   : > { %s1099_s8 = scalar_lea.hbm %s1151_s3, %s720_s10  ;;  %s559_s15 = sshll.u32 %s1057_s23, 4  ;;  %s560_s15 = int_to_ptr.vmem [resolvable:$true] %s559_s15 }
 0x1ba   : > { %s533_s7 = scalar_lea.sflag [#allocation7], %s1038_s29  ;;  %s842_s4 = scalar_lea.vmem %s560_s15, 128 }
 0x1bb   : > { %p843_p11 = scmp.ne.s32.totalorder %s560_s15, %s842_s4  ;;  %s947_s5 = smov [#allocation6]  }
 0x1bc   : > { %s846_s9 = sshll.u32 %s947_s5, 4  ;;  %s847_s9 = int_to_ptr.vmem [resolvable:$false] %s846_s9 }
 0x1bd   : > { %p844_p12 = pnand %p843_p11, %p1017_p3  ;;  %s848_s11 = scalar_lea.vmem %s847_s9, 256 }
 0x1be   : > { %p849_p0 = scmp.lt.s32.totalorder %s560_s15, %s847_s9  ;;  %p850_p1 = scmp.lt.s32.totalorder %s848_s11, %s842_s4 }
 0x1bf   : > { %p845_p13 = pneg %p844_p12 }
 0x1c0   : > { %p851_p2 = por %p850_p1, %p849_p0 }
 0x1c2   : > { %p852_p4 = pnand %p851_p2, %p845_p13 }
 0x1c4   : > { %855 = shalt.err (!%p852_p4)
}
 0x1c5   : > { %s856_s16 = scalar_lea.hbm %s1099_s8, 128  ;;  %s860_s10 = scalar_lea.hbm %s1151_s3, 256 }
 0x1c6   : > { %p857_p5 = scmp.ne.s32.totalorder %s1099_s8, %s856_s16  ;;  %p861_p8 = scmp.lt.u32.totalorder %s1099_s8, %s1151_s3 }
 0x1c7   : > { %p862_p10 = scmp.lt.u32.totalorder %s860_s10, %s856_s16  ;;  %p864_p12 = scmp.lt.u32.totalorder %s856_s16, %s1099_s8 }
 0x1c8   : > { %p858_p6 = pnand %p857_p5, %p1017_p3 }
 0x1c9   : > { %p863_p11 = por %p862_p10, %p861_p8 }
 0x1ca   : > { %p859_p7 = pneg %p858_p6 }
 0x1cb   : > { %p865_p13 = por %p864_p12, %p863_p11 }
 0x1cd   : > { %p866_p0 = pnand %p865_p13, %p859_p7 }
 0x1cf   : > { %869 = shalt.err (!%p866_p0)
}
 0x1d0   : > { %731 = dma.vmem_to_hbm [thread:$0]  (%p1017_p3), %s560_s15, 128, %s1099_s8, %s533_s7  }
 0x1d1 PF: > { %p741_p1 = scmp.ge.s32.totalorder %s940_s19, 2  ;;  %s571_s27 = sand.u32 1, %s912_s12  }
 0x1d2   : > { %s572_s20 = scalar_lea.sflag [#allocation5], %s571_s27 }
 0x1d3   : > { %p735_p2 = pnand %p741_p1, %p1027_p9 }
 0x1d5   : > { %903 = dma.done.wait (!%p735_p2), %s572_s20, 128  }
 0x1d6   : > { %905 = vsyncadd (!%p735_p2), %s572_s20, 4294967168  ;;  %s581_s30 = scalar_lea.sflag [#allocation7], %s571_s27 }
 0x1d7   : > { %907 = dma.done.wait (!%p735_p2), %s581_s30, 128  }
 0x1d8   : > { %909 = vsyncadd (!%p735_p2), %s581_s30, 4294967168  ;;  %s20_s19 = sadd.s32 1, %s940_s19   ;;  %s1156_s24 = sld [smem:[#allocation10_spill]] }
 0x1d9   : > { %p17_p4 = scmp.ge.s32.totalorder %s20_s19, 6   ;;  %s1157_s12 = smov %s916_s13 }
 0x1da   : > { %s1158_s13 = smov %s920_s14  ;;  %s1159_s14 = smov %s1035_s28 }
 0x1db   : > { %s1160_s15 = smov %s932_s17  ;;  %s1161_s16 = smov %s936_s18 }
 0x1dc   : > { %s1162_s17 = smov %s1165_s22  ;;  %19 = sbr.rel (!%p17_p4) target bundleno = 7 (0x7), region = 99 }
 0x1de   : > { %s1163_s18 = smov %s1156_s24 }
 0x1e3   :  { %586 = vsyncpa [#allocation5], 1 }
 0x1e4   :  { %588 = vsyncpa [#allocation5 + $0x1], 1 }
 0x1e5   :  { %589 = vsyncpa [#allocation7], 1 }
 0x1e6   :  { %591 = vsyncpa [#allocation7 + $0x1], 1 }

</bundles_post_ra>
